<compile_context>
chip_gen: v6e
topology: v6e:2x2x1
jax: 0.10.0
libtpu: 0.0.40
codegen_flags: <defaults>
</compile_context>

<pallas_src>
import functools

import jax
import jax.numpy as jnp
from jax.experimental import pallas as pl
from jax.experimental import pallas as pl  # noqa: F401  (kept for clarity)
from jax.experimental.pallas import tpu as pltpu  # noqa: F401  (VMEM-resident gridless call; no pltpu-specific features needed)


def _round_up(x, m):
    return ((x + m - 1) // m) * m


def _sage_fused_kernel(adj_ref, x_ref, w_ref, ss_ref, o_ref, *, num_layers):
    """Entire SAGE stack, fully VMEM resident (gridless single invocation).

    adj_ref: (N, N)        f32          raw (un-normalized) adjacency, row i = neighbors of i
    x_ref:   (N, Fc)       compute dt   node features, zero-padded to common width Fc
    w_ref:   (L, 2, Fc, Fc) compute dt  per layer: [0]=W_l (neighbors), [1]=W_r (root), zero-padded
    ss_ref:  (L, 2, Fc)    f32          row0 = eval-BN scale, row1 = BN shift + folded conv bias
    o_ref:   (N, Fc)       f32
    """
    a = adj_ref[...]                                              # (N, N) f32
    # Mean aggregation folded in-kernel: row-degree reduce (XLU) + approx
    # reciprocal (EUP).  NOTE: assumes a binary adjacency (degree 0 or >= 1),
    # as produced by the harness / the module's SparseTensor adjacency.
    deg = jnp.sum(a, axis=1, keepdims=True)                       # (N, 1)
    inv = jnp.where(deg > 0.0,
                    pl.reciprocal(jnp.maximum(deg, 1.0), approx=True),
                    0.0)
    a = (a * inv).astype(x_ref.dtype)                             # row-normalized, compute dtype

    x = x_ref[...]                                                # (N, Fc)
    for l in range(num_layers):
        ss = ss_ref[l, :, :]                                      # (2, Fc) f32
        # mean aggregation (1/deg already folded into `a`)
        agg = jnp.dot(a, x, preferred_element_type=jnp.float32)   # (N, Fc) f32
        # SAGEConv: lin_l(agg) + lin_r(x) -- two small dots, no concat copy.
        out = (jnp.dot(agg.astype(x_ref.dtype), w_ref[l, 0, :, :],
                       preferred_element_type=jnp.float32) +
               jnp.dot(x, w_ref[l, 1, :, :],
                       preferred_element_type=jnp.float32))       # (N, Fc) f32
        # conv bias + eval-mode BatchNorm, folded into one FMA (f32 epilogue).
        out = out * ss[0:1, :] + ss[1:2, :]
        if l < num_layers - 1:
            # ReLU; dropout is identity in eval mode.
            x = jnp.maximum(out, 0.0).astype(x_ref.dtype)
        else:
            o_ref[...] = out.astype(o_ref.dtype)


def pack_sage(features, params, compute_dtype=jnp.bfloat16):
    """One-time prepack of module state (features + all layer weights).

    Runs once outside the per-call path, so every forward() is a single
    pallas_call with no wrapper-side pad/concat ops and only 4 input DMAs.
    """
    n_nodes, in_feats = features.shape
    n_layers = len(params)
    dims = [in_feats] + [p["w_l"].shape[1] for p in params]
    out_feats = dims[-1]
    fc = _round_up(max(dims), 8)        # common feature width (sublane aligned, NOT 128-padded)

    w_stack = jnp.zeros((n_layers, 2, fc, fc), jnp.float32)
    ss_stack = jnp.zeros((n_layers, 2, fc), jnp.float32)
    for l, p in enumerate(params):
        fin, fout = p["w_l"].shape
        w_stack = w_stack.at[l, 0, :fin, :fout].set(p["w_l"])
        w_stack = w_stack.at[l, 1, :fin, :fout].set(p["w_r"])
        # Fold conv bias into the eval-mode BN affine: (h + b)*s + t = h*s + (t + b*s).
        ss_stack = ss_stack.at[l, 0, :fout].set(p["scale"][0])
        ss_stack = ss_stack.at[l, 1, :fout].set((p["shift"] + p["bias"] * p["scale"])[0])
        # Padded output lanes keep scale == shift == 0 so they stay exactly 0
        # through ReLU and never contaminate the next layer (load-bearing!).

    x0 = jnp.zeros((n_nodes, fc), compute_dtype)
    x0 = x0.at[:, :in_feats].set(features.astype(compute_dtype))

    return dict(x0=x0,
                w_stack=w_stack.astype(compute_dtype),
                ss_stack=ss_stack,            # keep the affine epilogue in f32
                num_layers=n_layers,
                out_feats=out_feats)


def sage_forward(adj, packed):
    """Full SAGE.forward (eval mode): one gridless, fully VMEM-resident call."""
    x0, w, ss = packed["x0"], packed["w_stack"], packed["ss_stack"]
    n_layers, out_feats = packed["num_layers"], packed["out_feats"]
    n, fc = x0.shape

    flops = n_layers * (2 * n * n * fc + 2 * (2 * n * fc * fc))
    bytes_accessed = (adj.size * 4
                      + x0.size * x0.dtype.itemsize
                      + w.size * w.dtype.itemsize
                      + ss.size * 4
                      + n * fc * 4)

    kernel = functools.partial(_sage_fused_kernel, num_layers=n_layers)
    out = pl.pallas_call(
        kernel,
        out_shape=jax.ShapeDtypeStruct((n, fc), jnp.float32),
        cost_estimate=pl.CostEstimate(flops=flops, transcendentals=n,
                                      bytes_accessed=bytes_accessed),
    )(adj.astype(jnp.float32), x0, w, ss)
    return out[:, :out_feats]


def make_sage_params(key, in_feats, hidden, out_feats, num_layers):
    """Deterministic synthetic parameters matching SAGE.__init__ shapes."""
    dims = [in_feats] + [hidden] * (num_layers - 1) + [out_feats]
    params = []
    for l in range(num_layers):
        fin, fout = dims[l], dims[l + 1]
        key, k1, k2, k3, k4, k5 = jax.random.split(key, 6)
        lim = 1.0 / jnp.sqrt(jnp.float32(fin))
        w_l = jax.random.uniform(k1, (fin, fout), jnp.float32, -lim, lim)
        w_r = jax.random.uniform(k2, (fin, fout), jnp.float32, -lim, lim)
        bias = jax.random.uniform(k3, (1, fout), jnp.float32, -lim, lim)
        if l < num_layers - 1:
            # BatchNorm1d(hidden) -- eval mode: running_mean=0, running_var=1,
            # affine gamma/beta initialized deterministically here.
            gamma = 1.0 + 0.1 * jax.random.normal(k4, (1, fout), jnp.float32)
            beta = 0.1 * jax.random.normal(k5, (1, fout), jnp.float32)
            eps = 1e-5
            running_mean = jnp.zeros((1, fout), jnp.float32)
            running_var = jnp.ones((1, fout), jnp.float32)
            scale = gamma / jnp.sqrt(running_var + eps)
            shift = beta - running_mean * scale
        else:
            scale = jnp.ones((1, fout), jnp.float32)
            shift = jnp.zeros((1, fout), jnp.float32)
        params.append(dict(w_l=w_l, w_r=w_r, bias=bias, scale=scale, shift=shift))
    return params


def sage_reference(features, adj, params):
    """Pure-JAX f32 reference for validation."""
    deg = jnp.sum(adj, axis=1, keepdims=True)
    deg_inv = jnp.where(deg > 0, 1.0 / jnp.maximum(deg, 1.0), 0.0)
    x = features
    n_layers = len(params)
    for l, p in enumerate(params):
        agg = (adj @ x) * deg_inv
        x = agg @ p["w_l"] + x @ p["w_r"] + p["bias"]
        if l < n_layers - 1:
            x = jnp.maximum(x * p["scale"] + p["shift"], 0.0)
    return x


if __name__ == "__main__":
    N = 64            # number of graph nodes
    IN_FEATS = 32     # features.shape[1]
    HIDDEN = 32       # hidden_channels
    OUT = 16          # out_channels
    NUM_LAYERS = 3
    # dropout = 0.5 -> identity in eval mode

    key = jax.random.PRNGKey(0)
    k_feat, k_adj, k_par = jax.random.split(key, 3)

    features = jax.random.normal(k_feat, (N, IN_FEATS), jnp.float32)

    # Dense random binary adjacency with self-loops (row i = neighbors of i).
    adj = (jax.random.uniform(k_adj, (N, N)) < 0.1).astype(jnp.float32)
    adj = jnp.maximum(adj, jnp.eye(N, dtype=jnp.float32))

    params = make_sage_params(k_par, IN_FEATS, HIDDEN, OUT, NUM_LAYERS)
    ref = sage_reference(features, adj, params)

    # 1) f32 compute path: validates the kernel logic (only the in-kernel
    #    approximate reciprocal differs from the pure-JAX reference).
    packed_f32 = pack_sage(features, params, compute_dtype=jnp.float32)
    fwd_f32 = jax.jit(lambda a: sage_forward(a, packed_f32))
    out_f32 = jax.block_until_ready(fwd_f32(adj))
    assert out_f32.shape == (N, OUT), out_f32.shape
    assert jnp.allclose(out_f32, ref, atol=1e-2, rtol=1e-2), "f32 mismatch vs reference"

    # 2) bf16 compute path (production): MXU-native operands, f32 accumulation
    #    and epilogue.  Loosened tolerance per bf16 precision.
    packed_bf16 = pack_sage(features, params, compute_dtype=jnp.bfloat16)
    fwd_bf16 = jax.jit(lambda a: sage_forward(a, packed_bf16))
    out_bf16 = jax.block_until_ready(fwd_bf16(adj))
    assert out_bf16.shape == (N, OUT), out_bf16.shape
    assert jnp.allclose(out_bf16, ref, atol=5e-2, rtol=5e-2), "bf16 mismatch vs reference"

    print("KERNEL_OK")
</pallas_src>

<mosaic_0001>
module attributes {stable_mosaic.version = 11 : i64} {
  func.func @_sage_fused_kernel(%arg0: memref<64x64xf32, #tpu.memory_space<vmem>>, %arg1: memref<64x32xf32, #tpu.memory_space<vmem>>, %arg2: memref<3x2x32x32xf32, #tpu.memory_space<vmem>>, %arg3: memref<3x2x32xf32, #tpu.memory_space<vmem>>, %arg4: memref<64x32xf32, #tpu.memory_space<vmem>>) attributes {dimension_semantics = [], scalar_prefetch = 0 : i64, scratch_operands = 0 : i64, tpu.core_type = #tpu.core_type<tc>} {
    %c0 = arith.constant 0 : index
    %c0_0 = arith.constant 0 : index
    %0 = vector.load %arg0[%c0, %c0_0] : memref<64x64xf32, #tpu.memory_space<vmem>>, vector<64x64xf32>
    %cst = arith.constant dense<0.000000e+00> : vector<64xf32>
    %1 = vector.multi_reduction <add>, %0, %cst [1] : vector<64x64xf32> to vector<64xf32>
    %2 = vector.shape_cast %1 : vector<64xf32> to vector<64x1xf32>
    %cst_1 = arith.constant 0.000000e+00 : f32
    %3 = vector.broadcast %cst_1 : f32 to vector<64x1xf32>
    %4 = arith.cmpf ogt, %2, %3 : vector<64x1xf32>
    %cst_2 = arith.constant 1.000000e+00 : f32
    %5 = vector.broadcast %cst_2 : f32 to vector<64x1xf32>
    %6 = arith.maximumf %2, %5 : vector<64x1xf32>
    %7 = tpu.reciprocal %6 {approx = true} : vector<64x1xf32> -> vector<64x1xf32>
    %cst_3 = arith.constant 0.000000e+00 : f32
    %8 = vector.broadcast %cst_3 : f32 to vector<64x1xf32>
    %9 = arith.select %4, %7, %8 : vector<64x1xi1>, vector<64x1xf32>
    %10 = vector.broadcast %9 : vector<64x1xf32> to vector<64x64xf32>
    %11 = arith.mulf %0, %10 : vector<64x64xf32>
    %c0_4 = arith.constant 0 : index
    %c0_5 = arith.constant 0 : index
    %12 = vector.load %arg1[%c0_4, %c0_5] : memref<64x32xf32, #tpu.memory_space<vmem>>, vector<64x32xf32>
    %c0_6 = arith.constant 0 : index
    %c0_7 = arith.constant 0 : index
    %c0_8 = arith.constant 0 : index
    %13 = vector.load %arg3[%c0_6, %c0_7, %c0_8] : memref<3x2x32xf32, #tpu.memory_space<vmem>>, vector<1x2x32xf32>
    %14 = vector.shape_cast %13 : vector<1x2x32xf32> to vector<2x32xf32>
    %cst_9 = arith.constant dense<0.000000e+00> : vector<64x32xf32>
    %15 = tpu.matmul %11, %12, %cst_9 {dimension_numbers = #tpu.dot_dimension_numbers<[1], [0], [0], [1], [0, 0, 1, 1], [], []>} : vector<64x64xf32>, vector<64x32xf32>, vector<64x32xf32> -> vector<64x32xf32>
    %c0_10 = arith.constant 0 : index
    %c0_11 = arith.constant 0 : index
    %c0_12 = arith.constant 0 : index
    %c0_13 = arith.constant 0 : index
    %16 = vector.load %arg2[%c0_10, %c0_11, %c0_12, %c0_13] : memref<3x2x32x32xf32, #tpu.memory_space<vmem>>, vector<1x1x32x32xf32>
    %17 = vector.shape_cast %16 : vector<1x1x32x32xf32> to vector<32x32xf32>
    %cst_14 = arith.constant dense<0.000000e+00> : vector<64x32xf32>
    %18 = tpu.matmul %15, %17, %cst_14 {dimension_numbers = #tpu.dot_dimension_numbers<[1], [0], [0], [1], [0, 0, 1, 1], [], []>} : vector<64x32xf32>, vector<32x32xf32>, vector<64x32xf32> -> vector<64x32xf32>
    %c0_15 = arith.constant 0 : index
    %c1 = arith.constant 1 : index
    %c0_16 = arith.constant 0 : index
    %c0_17 = arith.constant 0 : index
    %19 = vector.load %arg2[%c0_15, %c1, %c0_16, %c0_17] : memref<3x2x32x32xf32, #tpu.memory_space<vmem>>, vector<1x1x32x32xf32>
    %20 = vector.shape_cast %19 : vector<1x1x32x32xf32> to vector<32x32xf32>
    %cst_18 = arith.constant dense<0.000000e+00> : vector<64x32xf32>
    %21 = tpu.matmul %12, %20, %cst_18 {dimension_numbers = #tpu.dot_dimension_numbers<[1], [0], [0], [1], [0, 0, 1, 1], [], []>} : vector<64x32xf32>, vector<32x32xf32>, vector<64x32xf32> -> vector<64x32xf32>
    %22 = arith.addf %18, %21 : vector<64x32xf32>
    %23 = vector.extract_strided_slice %14 {offsets = [0, 0], sizes = [1, 32], strides = [1, 1]} : vector<2x32xf32> to vector<1x32xf32>
    %24 = vector.broadcast %23 : vector<1x32xf32> to vector<64x32xf32>
    %25 = arith.mulf %22, %24 : vector<64x32xf32>
    %26 = vector.extract_strided_slice %14 {offsets = [1, 0], sizes = [1, 32], strides = [1, 1]} : vector<2x32xf32> to vector<1x32xf32>
    %27 = vector.broadcast %26 : vector<1x32xf32> to vector<64x32xf32>
    %28 = arith.addf %25, %27 : vector<64x32xf32>
    %cst_19 = arith.constant 0.000000e+00 : f32
    %29 = vector.broadcast %cst_19 : f32 to vector<64x32xf32>
    %30 = arith.maximumf %28, %29 : vector<64x32xf32>
    %c1_20 = arith.constant 1 : index
    %c0_21 = arith.constant 0 : index
    %c0_22 = arith.constant 0 : index
    %31 = vector.load %arg3[%c1_20, %c0_21, %c0_22] : memref<3x2x32xf32, #tpu.memory_space<vmem>>, vector<1x2x32xf32>
    %32 = vector.shape_cast %31 : vector<1x2x32xf32> to vector<2x32xf32>
    %cst_23 = arith.constant dense<0.000000e+00> : vector<64x32xf32>
    %33 = tpu.matmul %11, %30, %cst_23 {dimension_numbers = #tpu.dot_dimension_numbers<[1], [0], [0], [1], [0, 0, 1, 1], [], []>} : vector<64x64xf32>, vector<64x32xf32>, vector<64x32xf32> -> vector<64x32xf32>
    %c1_24 = arith.constant 1 : index
    %c0_25 = arith.constant 0 : index
    %c0_26 = arith.constant 0 : index
    %c0_27 = arith.constant 0 : index
    %34 = vector.load %arg2[%c1_24, %c0_25, %c0_26, %c0_27] : memref<3x2x32x32xf32, #tpu.memory_space<vmem>>, vector<1x1x32x32xf32>
    %35 = vector.shape_cast %34 : vector<1x1x32x32xf32> to vector<32x32xf32>
    %cst_28 = arith.constant dense<0.000000e+00> : vector<64x32xf32>
    %36 = tpu.matmul %33, %35, %cst_28 {dimension_numbers = #tpu.dot_dimension_numbers<[1], [0], [0], [1], [0, 0, 1, 1], [], []>} : vector<64x32xf32>, vector<32x32xf32>, vector<64x32xf32> -> vector<64x32xf32>
    %c1_29 = arith.constant 1 : index
    %c1_30 = arith.constant 1 : index
    %c0_31 = arith.constant 0 : index
    %c0_32 = arith.constant 0 : index
    %37 = vector.load %arg2[%c1_29, %c1_30, %c0_31, %c0_32] : memref<3x2x32x32xf32, #tpu.memory_space<vmem>>, vector<1x1x32x32xf32>
    %38 = vector.shape_cast %37 : vector<1x1x32x32xf32> to vector<32x32xf32>
    %cst_33 = arith.constant dense<0.000000e+00> : vector<64x32xf32>
    %39 = tpu.matmul %30, %38, %cst_33 {dimension_numbers = #tpu.dot_dimension_numbers<[1], [0], [0], [1], [0, 0, 1, 1], [], []>} : vector<64x32xf32>, vector<32x32xf32>, vector<64x32xf32> -> vector<64x32xf32>
    %40 = arith.addf %36, %39 : vector<64x32xf32>
    %41 = vector.extract_strided_slice %32 {offsets = [0, 0], sizes = [1, 32], strides = [1, 1]} : vector<2x32xf32> to vector<1x32xf32>
    %42 = vector.broadcast %41 : vector<1x32xf32> to vector<64x32xf32>
    %43 = arith.mulf %40, %42 : vector<64x32xf32>
    %44 = vector.extract_strided_slice %32 {offsets = [1, 0], sizes = [1, 32], strides = [1, 1]} : vector<2x32xf32> to vector<1x32xf32>
    %45 = vector.broadcast %44 : vector<1x32xf32> to vector<64x32xf32>
    %46 = arith.addf %43, %45 : vector<64x32xf32>
    %cst_34 = arith.constant 0.000000e+00 : f32
    %47 = vector.broadcast %cst_34 : f32 to vector<64x32xf32>
    %48 = arith.maximumf %46, %47 : vector<64x32xf32>
    %c2 = arith.constant 2 : index
    %c0_35 = arith.constant 0 : index
    %c0_36 = arith.constant 0 : index
    %49 = vector.load %arg3[%c2, %c0_35, %c0_36] : memref<3x2x32xf32, #tpu.memory_space<vmem>>, vector<1x2x32xf32>
    %50 = vector.shape_cast %49 : vector<1x2x32xf32> to vector<2x32xf32>
    %cst_37 = arith.constant dense<0.000000e+00> : vector<64x32xf32>
    %51 = tpu.matmul %11, %48, %cst_37 {dimension_numbers = #tpu.dot_dimension_numbers<[1], [0], [0], [1], [0, 0, 1, 1], [], []>} : vector<64x64xf32>, vector<64x32xf32>, vector<64x32xf32> -> vector<64x32xf32>
    %c2_38 = arith.constant 2 : index
    %c0_39 = arith.constant 0 : index
    %c0_40 = arith.constant 0 : index
    %c0_41 = arith.constant 0 : index
    %52 = vector.load %arg2[%c2_38, %c0_39, %c0_40, %c0_41] : memref<3x2x32x32xf32, #tpu.memory_space<vmem>>, vector<1x1x32x32xf32>
    %53 = vector.shape_cast %52 : vector<1x1x32x32xf32> to vector<32x32xf32>
    %cst_42 = arith.constant dense<0.000000e+00> : vector<64x32xf32>
    %54 = tpu.matmul %51, %53, %cst_42 {dimension_numbers = #tpu.dot_dimension_numbers<[1], [0], [0], [1], [0, 0, 1, 1], [], []>} : vector<64x32xf32>, vector<32x32xf32>, vector<64x32xf32> -> vector<64x32xf32>
    %c2_43 = arith.constant 2 : index
    %c1_44 = arith.constant 1 : index
    %c0_45 = arith.constant 0 : index
    %c0_46 = arith.constant 0 : index
    %55 = vector.load %arg2[%c2_43, %c1_44, %c0_45, %c0_46] : memref<3x2x32x32xf32, #tpu.memory_space<vmem>>, vector<1x1x32x32xf32>
    %56 = vector.shape_cast %55 : vector<1x1x32x32xf32> to vector<32x32xf32>
    %cst_47 = arith.constant dense<0.000000e+00> : vector<64x32xf32>
    %57 = tpu.matmul %48, %56, %cst_47 {dimension_numbers = #tpu.dot_dimension_numbers<[1], [0], [0], [1], [0, 0, 1, 1], [], []>} : vector<64x32xf32>, vector<32x32xf32>, vector<64x32xf32> -> vector<64x32xf32>
    %58 = arith.addf %54, %57 : vector<64x32xf32>
    %59 = vector.extract_strided_slice %50 {offsets = [0, 0], sizes = [1, 32], strides = [1, 1]} : vector<2x32xf32> to vector<1x32xf32>
    %60 = vector.broadcast %59 : vector<1x32xf32> to vector<64x32xf32>
    %61 = arith.mulf %58, %60 : vector<64x32xf32>
    %62 = vector.extract_strided_slice %50 {offsets = [1, 0], sizes = [1, 32], strides = [1, 1]} : vector<2x32xf32> to vector<1x32xf32>
    %63 = vector.broadcast %62 : vector<1x32xf32> to vector<64x32xf32>
    %64 = arith.addf %61, %63 : vector<64x32xf32>
    %c0_48 = arith.constant 0 : index
    %c0_49 = arith.constant 0 : index
    %65 = vector.load %arg4[%c0_48, %c0_49] : memref<64x32xf32, #tpu.memory_space<vmem>>, vector<64x32xf32>
    tpu.vector_store %arg4[%c0_48, %c0_49], %64 {strides = array<i32>} : memref<64x32xf32, #tpu.memory_space<vmem>>, vector<64x32xf32>,
    return
  }
}

</mosaic_0001>

<bundles_post_ra>
// kernel: _lambda_.1
= control target key start
LH: loop header
LB: loop body
LE: loop exit
PB: predicated region body
PF: predicated region fallthrough
CT: control target
= control target key end

     0   :  { %9 = vsyncpa [#allocation3], 0  ;;  %s2157_s0 = inlined_call_operand.hbm [shape: f32[64,64], index: 0, kind: input, shape index: {}]   ;;  %s2158_s1 = inlined_call_operand.hbm [shape: f32[64,32], index: 1, kind: input, shape index: {}]   ;;  %s2159_s2 = inlined_call_operand.hbm [shape: f32[3,2,32,32], index: 2, kind: input, shape index: {}]   ;;  %s2160_s3 = inlined_call_operand.hbm [shape: f32[3,2,32], index: 3, kind: input, shape index: {}]   ;;  %s2161_s4 = inlined_call_operand.vmem [shape: f32[64,32], index: 4, kind: output, shape index: {}]  }
   0x1   :  { %10 = vsyncpa [#allocation5], 0 }
   0x2   :  { %11 = vsyncpa [#allocation8], 0  ;;  %s1918_s15 = smov [#allocation4]   ;;  %s1919_s17 = smov [#allocation2]  }
   0x3   :  { %s29_s16 = sshll.u32 %s1918_s15, 4  ;;  %s17_s18 = sshll.u32 %s1919_s17, 4  ;;  %s30_s16 = int_to_ptr.vmem [resolvable:$true] %s29_s16  ;;  %s18_s18 = int_to_ptr.vmem [resolvable:$true] %s17_s18 }
   0x4   :  { %s1840_s19 = scalar_lea.vmem %s30_s16, 1024  ;;  %p1845_p1 = scmp.lt.s32.totalorder %s30_s16, %s30_s16 }
   0x5   :  { %p1841_p0 = scmp.ne.s32.totalorder %s30_s16, %s1840_s19  ;;  %p1846_p2 = scmp.lt.s32.totalorder %s1840_s19, %s1840_s19 }
   0x7   :  { %p1847_p3 = por %p1846_p2, %p1845_p1 }
   0x9   :  { %p1848_p4 = pnand %p1847_p3, %p1841_p0 }
   0xb   :  { %1851 = shalt.err (!%p1848_p4)
}
   0xc   :  { %s1920_s20 = smov 128   ;;  %s1921_s21 = smov 8  }
   0xd   :  { %35 = dma.hbm_to_vmem [thread:$0]  %s2158_s1, 1024, %s30_s16, [#allocation5], %s1920_s20, %s1920_s20, %s1921_s21  }
   0xe   :  { %s1860_s24 = scalar_lea.vmem %s18_s18, 1024  ;;  %p1865_p6 = scmp.lt.s32.totalorder %s18_s18, %s18_s18 }
   0xf   :  { %p1861_p5 = scmp.ne.s32.totalorder %s18_s18, %s1860_s24  ;;  %p1866_p7 = scmp.lt.s32.totalorder %s1860_s24, %s1860_s24 }
  0x11   :  { %p1867_p8 = por %p1866_p7, %p1865_p6 }
  0x13   :  { %p1868_p9 = pnand %p1867_p8, %p1861_p5 }
  0x15   :  { %1871 = shalt.err (!%p1868_p9)
}
  0x16   :  { %23 = dma.hbm_to_vmem [thread:$0]  %s2157_s0, 1024, %s18_s18, [#allocation3], %s1920_s20, %s1920_s20, %s1921_s21  }
  0x17   :  { %s1922_s27 = smov [#allocation6]   ;;  %s1923_s29 = smov [#allocation7]  }
  0x18   :  { %s41_s28 = sshll.u32 %s1922_s27, 4  ;;  %s53_s30 = sshll.u32 %s1923_s29, 4  ;;  %s42_s28 = int_to_ptr.vmem [resolvable:$true] %s41_s28  ;;  %s54_s30 = int_to_ptr.vmem [resolvable:$true] %s53_s30 }
  0x19   :  { %s1880_s5 = scalar_lea.vmem %s42_s28, 3072  ;;  %p1885_p11 = scmp.lt.s32.totalorder %s42_s28, %s42_s28 }
  0x1a   :  { %p1881_p10 = scmp.ne.s32.totalorder %s42_s28, %s1880_s5  ;;  %p1886_p12 = scmp.lt.s32.totalorder %s1880_s5, %s1880_s5 }
  0x1c   :  { %p1887_p13 = por %p1886_p12, %p1885_p11 }
  0x1e   :  { %p1888_p0 = pnand %p1887_p13, %p1881_p10 }
  0x20   :  { %1891 = shalt.err (!%p1888_p0)
}
  0x21   :  { %47 = dma.hbm_to_vmem [thread:$0]  %s2159_s2, 3072, %s42_s28, [#allocation5], %s1920_s20, %s1920_s20, %s1921_s21  }
  0x22   :  { %s1900_s7 = scalar_lea.vmem %s54_s30, 96  ;;  %p1905_p2 = scmp.lt.s32.totalorder %s54_s30, %s54_s30 }
  0x23   :  { %p1901_p1 = scmp.ne.s32.totalorder %s54_s30, %s1900_s7  ;;  %p1906_p3 = scmp.lt.s32.totalorder %s1900_s7, %s1900_s7 }
  0x25   :  { %p1907_p4 = por %p1906_p3, %p1905_p2 }
  0x27   :  { %p1908_p5 = pnand %p1907_p4, %p1901_p1 }
  0x29   :  { %1911 = shalt.err (!%p1908_p5)
}
  0x2a   :  { %s1924_s0 = smov 32   ;;  %s1925_s8 = smov 2  }
  0x2b   :  { %59 = dma.hbm_to_vmem [thread:$0]  %s2160_s3, 96, %s54_s30, [#allocation8], %s1924_s0, %s1924_s0, %s1925_s8  }
  0x2c   :  { %1912 = dma.done.wait [#allocation3], 1024  }
  0x2d   :  { %1913 = vsyncadd [#allocation3], 4294966272 }
  0x2e   :  { %1914 = dma.done.wait [#allocation5], 4096  }
  0x2f   :  { %1915 = vsyncadd [#allocation5], 4294963200 }
  0x30   :  { %1916 = dma.done.wait [#allocation8], 96  }
  0x31   :  { %1917 = vsyncadd [#allocation8], 4294967200  ;;  %vm80_vm0 = vcmask 523264   ;;  %v1963_v0 = vld [vmem:[#allocation2 + $0x10] sm:$0xff]  ;;  %v1965_v1 = vld [vmem:[#allocation2] sm:$0xff]  ;;  %vm292_vm1 = vcmask 261120  }
  0x32   :  { %v1967_v2 = vld [vmem:[#allocation2 + $0x18] sm:$0xff]  ;;  %v87_v3 = vsel %vm80_vm0, %v1963_v0, 0.0  ;;  %v81_v4 = vsel %vm80_vm0, %v1965_v1, 0.0  ;;  %v1973_v5 = vld [vmem:[#allocation2 + $0x8] sm:$0xff]  ;;  %v1981_v9 = vld [vmem:[#allocation2 + $0x20] sm:$0xff] }
  0x33   :  { %88 = vadd.xlane.f32.xlu1 %v87_v3  ;;  %82 = vadd.xlane.f32.xlu0 %v81_v4  ;;  %v90_v6 = vsel %vm80_vm0, %v1967_v2, 0.0  ;;  %v84_v7 = vsel %vm80_vm0, %v1973_v5, 0.0  ;;  %v1979_v8 = vld [vmem:[#allocation2 + $0x28] sm:$0xff]  ;;  %v93_v11 = vsel %vm80_vm0, %v1981_v9, 0.0  ;;  %v1987_v12 = vld [vmem:[#allocation2 + $0x38] sm:$0xff]  ;;  %v1989_v13 = vld [vmem:[#allocation2 + $0x30] sm:$0xff] }
  0x34   :  { %v96_v10 = vsel %vm80_vm0, %v1979_v8, 0.0  ;;  %v102_v14 = vsel %vm80_vm0, %v1987_v12, 0.0  ;;  %v99_v15 = vsel %vm80_vm0, %v1989_v13, 0.0  ;;  %v152_v16 = vld [vmem:[#allocation4 + $0x38] sm:$0xff]  ;;  %v151_v17 = vld [vmem:[#allocation4 + $0x30] sm:$0xff]  ;;  %v150_v18 = vld [vmem:[#allocation4 + $0x28] sm:$0xff] }
  0x35   :  { %1596 = vmatprep.subr.mxu0 %v152_v16  ;;  %v149_v19 = vld [vmem:[#allocation4 + $0x20] sm:$0xff]  ;;  %v148_v20 = vld [vmem:[#allocation4 + $0x18] sm:$0xff]  ;;  %v147_v21 = vld [vmem:[#allocation4 + $0x10] sm:$0xff] }
  0x36   :  { %1597 = vmatpush3.msra.mxu0 %v152_v16  ;;  %v146_v22 = vld [vmem:[#allocation4 + $0x8] sm:$0xff]  ;;  %v145_v23 = vld [vmem:[#allocation4] sm:$0xff]  ;;  %v291_v24 = vld [vmem:[#allocation6 + $0x38] sm:$0xff] }
  0x37   :  { %91 = vadd.xlane.f32.xlu1 %v90_v6  ;;  %85 = vadd.xlane.f32.xlu0 %v84_v7  ;;  %v290_v25 = vld [vmem:[#allocation6 + $0x30] sm:$0xff]  ;;  %v289_v26 = vld [vmem:[#allocation6 + $0x28] sm:$0xff]  ;;  %v288_v27 = vld [vmem:[#allocation6 + $0x20] sm:$0xff] }
  0x38   :  { %1598 = vmatprep.subr.mxu0 %v151_v17  ;;  %1624 = vmatprep.subr.mxu1 %v291_v24  ;;  %v286_v28 = vld [vmem:[#allocation6 + $0x18] sm:$0xff]  ;;  %v285_v29 = vld [vmem:[#allocation6 + $0x10] sm:$0xff]  ;;  %v284_v30 = vld [vmem:[#allocation6 + $0x8] sm:$0xff] }
  0x39   :  { %1599 = vmatpush3.msra.mxu0 %v151_v17  ;;  %1632 = vmatprep.mubr.msk.f32.mxu1 %vm292_vm1, %v145_v23  ;;  %v283_v7 = vld [vmem:[#allocation6] sm:$0xff] }
  0x3a   :  { %1600 = vmatprep.subr.mxu0 %v150_v18  ;;  %1625 = vmatpush3.msra.mxu1 %v291_v24 }
  0x3b   :  { %97 = vadd.xlane.f32.xlu1 %v96_v10  ;;  %94 = vadd.xlane.f32.xlu0 %v93_v11 }
  0x3c   :  { %1601 = vmatpush3.msra.mxu0 %v150_v18  ;;  %1626 = vmatprep.subr.mxu1 %v290_v25 }
  0x3d   :  { %1602 = vmatprep.subr.mxu0 %v149_v19  ;;  %1627 = vmatpush3.msra.mxu1 %v290_v25  ;;  %v551_v25 = vlaneseq }
  0x3e   :  { %1603 = vmatpush3.msra.mxu0 %v149_v19  ;;  %1628 = vmatprep.subr.mxu1 %v289_v26 }
  0x3f   :  { %103 = vadd.xlane.f32.xlu1 %v102_v14  ;;  %100 = vadd.xlane.f32.xlu0 %v99_v15 }
  0x40   :  { %1604 = vmatprep.subr.mxu0 %v148_v20  ;;  %1629 = vmatpush3.msra.mxu1 %v289_v26 }
  0x41   :  { %1605 = vmatpush3.msra.mxu0 %v148_v20  ;;  %1630 = vmatprep.subr.mxu1 %v288_v27 }
  0x42   :  { %1606 = vmatprep.subr.mxu0 %v147_v21  ;;  %1631 = vmatpush3.msra.mxu1 %v288_v27  ;;  %v552_v27 = vshrl.u32 %v551_v25, 7 }
  0x43   :  { %1607 = vmatpush3.msra.mxu0 %v147_v21  ;;  %1633 = vmatmul.mubr.msk.f32.vlgmr.msra.gmra.mxu1 %vm292_vm1, %v146_v22 }
  0x44   :  { %1608 = vmatprep.subr.mxu0 %v146_v22  ;;  %1644 = vmatprep.subr.mxu1 %v286_v28 }
  0x45   :  { %1609 = vmatpush3.msra.mxu0 %v146_v22  ;;  %1635 = vmatprep.mubr.msk.f32.mxu1 %vm292_vm1, %v147_v21 }
  0x46   :  { %1610 = vmatprep.subr.mxu0 %v145_v23  ;;  %1645 = vmatpush3.msra.mxu1 %v286_v28 }
  0x47   :  { %1611 = vmatpush3.msra.mxu0 %v145_v23  ;;  %1646 = vmatprep.subr.mxu1 %v285_v29 }
  0x48   :  { %1647 = vmatpush3.msra.mxu1 %v285_v29  ;;  %v2053_v29 = vsub.s32 0, %v552_v27 }
  0x49   :  { %1636 = vmatmul.mubr.msk.f32.gmra.mxu1 %vm292_vm1, %v148_v20  ;;  %1648 = vmatprep.subr.mxu1 %v284_v30 }
  0x4a   :  { %1638 = vmatprep.mubr.msk.f32.mxu1 %vm292_vm1, %v149_v19  ;;  %1649 = vmatpush3.msra.mxu1 %v284_v30  ;;  %v696_v19 = vld [vmem:[#allocation6 + $0x60] sm:$0xff] }
  0x4b   :  { %1650 = vmatprep.subr.mxu1 %v283_v7  ;;  %v153_v30 = vld [vmem:[#allocation7] sm:$0x3] }
  0x4c   :  { %1651 = vmatpush3.msra.mxu1 %v283_v7 }
  0x4d   :  { %1639 = vmatmul.mubr.msk.f32.gmra.mxu1 %vm292_vm1, %v150_v18  ;;  %v697_v18 = vld [vmem:[#allocation6 + $0x68] sm:$0xff] }
  0x4e   :  { %1641 = vmatprep.mubr.msk.f32.mxu1 %vm292_vm1, %v151_v17  ;;  %v698_v17 = vld [vmem:[#allocation6 + $0x70] sm:$0xff] }
  0x51   :  { %1642 = vmatmul.mubr.msk.f32.gmra.mxu1 %vm292_vm1, %v152_v16  ;;  %v699_v16 = vld [vmem:[#allocation6 + $0x78] sm:$0xff] }
  0x52   :  { %1692 = vmatprep.subr.mxu1 %v699_v16 }
  0xbc   :  { %v89_v31 = vpop.xlane.xlu1 %88  ;;  %v83_v32 = vpop.xlane.xlu0 %82 }
  0xbd   :  { %v115_v33 = vmax.f32 %v89_v31, 1.0  ;;  %v113_v34 = vmax.f32 %v83_v32, 1.0  ;;  %vm105_vm2 = vcmp.gt.f32.partialorder %v83_v32, 0.0  ;;  %vm107_vm3 = vcmp.gt.f32.partialorder %v89_v31, 0.0 }
  0xbe   :  { %v2055_v32 = vsub.s32 1, %v552_v27 }
  0xbf   :  { %1816 = vrcp.f32 %v113_v34 }
  0xc0   :  { %v92_v35 = vpop.xlane.xlu1 %91  ;;  %v86_v36 = vpop.xlane.xlu0 %85  ;;  %1818 = vrcp.f32 %v115_v33  ;;  %v554_v33 = vrot.slane %v153_v30, %v2053_v29 }
  0xc1   :  { %v116_v37 = vmax.f32 %v92_v35, 1.0  ;;  %v114_v38 = vmax.f32 %v86_v36, 1.0  ;;  %vm106_vm4 = vcmp.gt.f32.partialorder %v86_v36, 0.0  ;;  %vm108_vm5 = vcmp.gt.f32.partialorder %v92_v35, 0.0 }
  0xc2   :  { %v566_v36 = vrot.slane %v153_v30, %v2055_v32 }
  0xc3   :  { %1820 = vrcp.f32 %v116_v37 }
  0xc4   :  { %1822 = vrcp.f32 %v114_v38  ;;  %v98_v39 = vpop.xlane.xlu1 %97  ;;  %v95_v40 = vpop.xlane.xlu0 %94 }
  0xc5   :  { %v118_v41 = vmax.f32 %v98_v39, 1.0  ;;  %v117_v42 = vmax.f32 %v95_v40, 1.0  ;;  %vm109_vm6 = vcmp.gt.f32.partialorder %v95_v40, 0.0  ;;  %vm110_vm7 = vcmp.gt.f32.partialorder %v98_v39, 0.0 }
  0xc7   :  { %1824 = vrcp.f32 %v118_v41 }
  0xc8   :  { %1826 = vrcp.f32 %v117_v42  ;;  %v104_v43 = vpop.xlane.xlu1 %103  ;;  %v101_v44 = vpop.xlane.xlu0 %100 }
  0xc9   :  { %v120_v45 = vmax.f32 %v104_v43, 1.0  ;;  %v119_v46 = vmax.f32 %v101_v44, 1.0  ;;  %vm111_vm8 = vcmp.gt.f32.partialorder %v101_v44, 0.0  ;;  %vm112_vm9 = vcmp.gt.f32.partialorder %v104_v43, 0.0 }
  0xcb   :  { %1828 = vrcp.f32 %v120_v45 }
  0xcc   :  { %1830 = vrcp.f32 %v119_v46  ;;  %v1817_v47 = vpop.eup %1816 }
  0xcd   :  { %v1819_v48 = vpop.eup %1818  ;;  %v129_v49 = vsel %vm105_vm2, %v1817_v47, 0.0 }
  0xce   :  { %v2004_v50 = vmul.f32 %v129_v49, %v1965_v1  ;;  %v131_v53 = vsel %vm107_vm3, %v1819_v48, 0.0 }
  0xcf   :  { %v2012_v57 = vmul.f32 %v131_v53, %v1963_v0 }
  0xd0   :  { %v1821_v51 = vpop.eup %1820  ;;  %1612 = vmatprep.mubr.msk.f32.mxu0 %vm80_vm0, %v2004_v50 }
  0xd1   :  { %v1823_v52 = vpop.eup %1822  ;;  %v132_v58 = vsel %vm108_vm5, %v1821_v51, 0.0 }
  0xd2   :  { %v130_v54 = vsel %vm106_vm4, %v1823_v52, 0.0  ;;  %v2019_v61 = vmul.f32 %v132_v58, %v1967_v2 }
  0xd3   :  { %v2009_v55 = vmul.f32 %v130_v54, %v1973_v5 }
  0xd4   :  { %v1825_v56 = vpop.eup %1824 }
  0xd5   :  { %v1827_v59 = vpop.eup %1826  ;;  %1613 = vmatmul.mubr.msk.f32.vlgmr.msra.gmra.mxu0 %vm80_vm0, %v2009_v55  ;;  %v134_v0 = vsel %vm110_vm7, %v1825_v56, 0.0 }
  0xd6   :  { %v133_v60 = vsel %vm109_vm6, %v1827_v59, 0.0  ;;  %1615 = vmatprep.mubr.msk.f32.mxu0 %vm80_vm0, %v2012_v57  ;;  %v2029_v4 = vmul.f32 %v134_v0, %v1979_v8 }
  0xd7   :  { %v2022_v62 = vmul.f32 %v133_v60, %v1981_v9 }
  0xd8   :  { %v1829_v63 = vpop.eup %1828 }
  0xd9   :  { %v1831_v1 = vpop.eup %1830  ;;  %1616 = vmatmul.mubr.msk.f32.gmra.mxu0 %vm80_vm0, %v2019_v61  ;;  %v136_v5 = vsel %vm112_vm9, %v1829_v63, 0.0 }
  0xda   :  { %v135_v3 = vsel %vm111_vm8, %v1831_v1, 0.0  ;;  %1618 = vmatprep.mubr.msk.f32.mxu0 %vm80_vm0, %v2022_v62  ;;  %v2039_v6 = vmul.f32 %v136_v5, %v1987_v12 }
  0xdb   :  { %v2032_v2 = vmul.f32 %v135_v3, %v1989_v13 }
  0xdd   :  { %1619 = vmatmul.mubr.msk.f32.gmra.mxu0 %vm80_vm0, %v2029_v4 }
  0xde   :  { %1621 = vmatprep.mubr.msk.f32.mxu0 %vm80_vm0, %v2032_v2 }
  0xe1   :  { %1622 = vmatmul.mubr.msk.f32.gmra.mxu0 %vm80_vm0, %v2039_v6 }
  0xe2   :  { %1680 = vmatprep.mubr.msk.f32.mxu0 %vm80_vm0, %v2004_v50 }
 0x103   :  { %v1634_v20 = vpop.f32.mrf.mxu1 }
 0x105   :  { %v383_v21 = vpop.f32.mrf.mxu1 }
 0x109   :  { %v1637_v22 = vpop.f32.mrf.mxu1 }
 0x10b   :  { %v393_v23 = vpop.f32.mrf.mxu1 }
 0x10d   :  { %v1640_v24 = vpop.f32.mrf.mxu1 }
 0x10f   :  { %v403_v26 = vpop.f32.mrf.mxu1 }
 0x111   :  { %v1643_v28 = vpop.f32.mrf.mxu1 }
 0x113   :  { %v413_v31 = vpop.f32.mrf.mxu1 }
 0x195   :  { %v1614_v8 = vpop.f32.mrf.mxu0 }
 0x197   :  { %v244_v9 = vpop.f32.mrf.mxu0 }
 0x198   :  { %1652 = vmatprep.mubr.msk.f32.mxu1 %vm292_vm1, %v244_v9 }
 0x199   :  { %v1617_v10 = vpop.f32.mrf.mxu0  ;;  %1653 = vmatmul.mubr.msk.f32.vlgmr.msra.gmra.mxu1 %vm292_vm1, %v1614_v8 }
 0x19a   :  { %1693 = vmatpush3.msra.mxu1 %v699_v16 }
 0x19b   :  { %v254_v11 = vpop.f32.mrf.mxu0  ;;  %1694 = vmatprep.subr.mxu1 %v698_v17 }
 0x19c   :  { %1655 = vmatprep.mubr.msk.f32.mxu1 %vm292_vm1, %v254_v11  ;;  %1695 = vmatpush3.msra.mxu1 %v698_v17 }
 0x19d   :  { %v1620_v12 = vpop.f32.mrf.mxu0  ;;  %1656 = vmatmul.mubr.msk.f32.gmra.mxu1 %vm292_vm1, %v1617_v10  ;;  %1696 = vmatprep.subr.mxu1 %v697_v18 }
 0x19e   :  { %1697 = vmatpush3.msra.mxu1 %v697_v18 }
 0x19f   :  { %v264_v13 = vpop.f32.mrf.mxu0  ;;  %1698 = vmatprep.subr.mxu1 %v696_v19 }
 0x1a0   :  { %1658 = vmatprep.mubr.msk.f32.mxu1 %vm292_vm1, %v264_v13  ;;  %1699 = vmatpush3.msra.mxu1 %v696_v19  ;;  %v693_v19 = vld [vmem:[#allocation6 + $0x50] sm:$0xff] }
 0x1a1   :  { %v1623_v14 = vpop.f32.mrf.mxu0  ;;  %1659 = vmatmul.mubr.msk.f32.gmra.mxu1 %vm292_vm1, %v1620_v12 }
 0x1a3   :  { %v274_v15 = vpop.f32.mrf.mxu0 }
 0x1a4   :  { %1661 = vmatprep.mubr.msk.f32.mxu1 %vm292_vm1, %v274_v15 }
 0x1a5   :  { %1662 = vmatmul.mubr.msk.f32.gmra.mxu1 %vm292_vm1, %v1623_v14 }
 0x259   :  { %v1654_v34 = vpop.f32.mrf.mxu1 }
 0x25a   :  { %v518_v35 = vadd.f32 %v1654_v34, %v1634_v20  ;;  %v692_v20 = vld [vmem:[#allocation6 + $0x48] sm:$0xff] }
 0x25b   :  { %v512_v37 = vpop.f32.mrf.mxu1  ;;  %v1104_v34 = vld [vmem:[#allocation6 + $0xa8] sm:$0xff] }
 0x25c   :  { %v556_v38 = vmul.f32 %v554_v33, %v518_v35  ;;  %v513_v39 = vadd.f32 %v512_v37, %v383_v21  ;;  %v691_v21 = vld [vmem:[#allocation6 + $0x40] sm:$0xff] }
 0x25d   :  { %v1657_v40 = vpop.f32.mrf.mxu1  ;;  %v1103_v35 = vld [vmem:[#allocation6 + $0xa0] sm:$0xff] }
 0x25e   :  { %v555_v41 = vmul.f32 %v554_v33, %v513_v39  ;;  %v528_v42 = vadd.f32 %v1657_v40, %v1637_v22  ;;  %v568_v43 = vadd.f32 %v566_v36, %v556_v38  ;;  %v584_v39 = vld [vmem:[#allocation7 + $0x2] sm:$0x3] }
 0x25f   :  { %v522_v44 = vpop.f32.mrf.mxu1 }
 0x260   :  { %v567_v45 = vadd.f32 %v566_v36, %v555_v41  ;;  %v558_v46 = vmul.f32 %v554_v33, %v528_v42  ;;  %v523_v47 = vadd.f32 %v522_v44, %v393_v23  ;;  %v576_v53 = vmax.f32 %v568_v43, 0.0 }
 0x261   :  { %v1660_v48 = vpop.f32.mrf.mxu1  ;;  %v961_v41 = vrot.slane %v584_v39, %v2053_v29 }
 0x262   :  { %v575_v49 = vmax.f32 %v567_v45, 0.0  ;;  %v557_v51 = vmul.f32 %v554_v33, %v523_v47  ;;  %v538_v52 = vadd.f32 %v1660_v48, %v1640_v24  ;;  %v570_v54 = vadd.f32 %v566_v36, %v558_v46 }
 0x263   :  { %v532_v56 = vpop.f32.mrf.mxu1  ;;  %v973_v45 = vrot.slane %v584_v39, %v2055_v32 }
 0x264   :  { %v569_v58 = vadd.f32 %v566_v36, %v557_v51  ;;  %v560_v59 = vmul.f32 %v554_v33, %v538_v52  ;;  %v533_v60 = vadd.f32 %v532_v56, %v403_v26  ;;  %1700 = vmatprep.mubr.msk.f32.mxu1 %vm292_vm1, %v575_v49  ;;  %v578_v5 = vmax.f32 %v570_v54, 0.0 }
 0x265   :  { %v1663_v63 = vpop.f32.mrf.mxu1  ;;  %1701 = vmatmul.mubr.msk.f32.vlgmr.msra.gmra.mxu1 %vm292_vm1, %v576_v53 }
 0x266   :  { %v577_v0 = vmax.f32 %v569_v58, 0.0  ;;  %v559_v1 = vmul.f32 %v554_v33, %v533_v60  ;;  %v548_v3 = vadd.f32 %v1663_v63, %v1643_v28  ;;  %v572_v7 = vadd.f32 %v566_v36, %v560_v59 }
 0x267   :  { %v542_v8 = vpop.f32.mrf.mxu1 }
 0x268   :  { %v571_v9 = vadd.f32 %v566_v36, %v559_v1  ;;  %v562_v10 = vmul.f32 %v554_v33, %v548_v3  ;;  %v543_v11 = vadd.f32 %v542_v8, %v413_v31  ;;  %1703 = vmatprep.mubr.msk.f32.mxu1 %vm292_vm1, %v577_v0  ;;  %v580_v15 = vmax.f32 %v572_v7, 0.0  ;;  %v1106_v31 = vld [vmem:[#allocation6 + $0xb8] sm:$0xff] }
 0x269   :  { %1704 = vmatmul.mubr.msk.f32.gmra.mxu1 %vm292_vm1, %v578_v5 }
 0x26a   :  { %v579_v12 = vmax.f32 %v571_v9, 0.0  ;;  %v561_v13 = vmul.f32 %v554_v33, %v543_v11  ;;  %v574_v14 = vadd.f32 %v566_v36, %v562_v10  ;;  %v1105_v33 = vld [vmem:[#allocation6 + $0xb0] sm:$0xff] }
 0x26c   :  { %1706 = vmatprep.mubr.msk.f32.mxu1 %vm292_vm1, %v579_v12  ;;  %v582_v16 = vmax.f32 %v574_v14, 0.0  ;;  %v573_v17 = vadd.f32 %v566_v36, %v561_v13 }
 0x26d   :  { %1707 = vmatmul.mubr.msk.f32.gmra.mxu1 %vm292_vm1, %v580_v15 }
 0x26e   :  { %1664 = vmatprep.subr.mxu0 %v582_v16  ;;  %v581_v18 = vmax.f32 %v573_v17, 0.0 }
 0x26f   :  { %1665 = vmatpush3.msra.mxu0 %v582_v16 }
 0x270   :  { %1666 = vmatprep.subr.mxu0 %v581_v18  ;;  %1709 = vmatprep.mubr.msk.f32.mxu1 %vm292_vm1, %v581_v18 }
 0x271   :  { %1667 = vmatpush3.msra.mxu0 %v581_v18  ;;  %1710 = vmatmul.mubr.msk.f32.gmra.mxu1 %vm292_vm1, %v582_v16 }
 0x272   :  { %1668 = vmatprep.subr.mxu0 %v580_v15  ;;  %1748 = vmatprep.mubr.msk.f32.mxu1 %vm80_vm0, %v2004_v50  ;;  %v694_v50 = vld [vmem:[#allocation6 + $0x58] sm:$0xff] }
 0x273   :  { %1669 = vmatpush3.msra.mxu0 %v580_v15 }
 0x274   :  { %1670 = vmatprep.subr.mxu0 %v579_v12 }
 0x275   :  { %1671 = vmatpush3.msra.mxu0 %v579_v12 }
 0x276   :  { %1672 = vmatprep.subr.mxu0 %v578_v5 }
 0x277   :  { %1673 = vmatpush3.msra.mxu0 %v578_v5 }
 0x278   :  { %1674 = vmatprep.subr.mxu0 %v577_v0 }
 0x279   :  { %1675 = vmatpush3.msra.mxu0 %v577_v0 }
 0x27a   :  { %1676 = vmatprep.subr.mxu0 %v576_v53 }
 0x27b   :  { %1677 = vmatpush3.msra.mxu0 %v576_v53 }
 0x27c   :  { %1678 = vmatprep.subr.mxu0 %v575_v49 }
 0x27d   :  { %1679 = vmatpush3.msra.mxu0 %v575_v49 }
 0x27e   :  { %1681 = vmatmul.mubr.msk.f32.vlgmr.msra.gmra.mxu0 %vm80_vm0, %v2009_v55  ;;  %1712 = vmatprep.subr.mxu0 %v694_v50 }
 0x27f   :  { %1683 = vmatprep.mubr.msk.f32.mxu0 %vm80_vm0, %v2012_v57  ;;  %1713 = vmatpush3.msra.mxu0 %v694_v50 }
 0x280   :  { %1714 = vmatprep.subr.mxu0 %v693_v19 }
 0x281   :  { %1715 = vmatpush3.msra.mxu0 %v693_v19 }
 0x282   :  { %1684 = vmatmul.mubr.msk.f32.gmra.mxu0 %vm80_vm0, %v2019_v61  ;;  %1716 = vmatprep.subr.mxu0 %v692_v20 }
 0x283   :  { %1686 = vmatprep.mubr.msk.f32.mxu0 %vm80_vm0, %v2022_v62  ;;  %1717 = vmatpush3.msra.mxu0 %v692_v20 }
 0x284   :  { %1718 = vmatprep.subr.mxu0 %v691_v21 }
 0x285   :  { %1719 = vmatpush3.msra.mxu0 %v691_v21 }
 0x286   :  { %1687 = vmatmul.mubr.msk.f32.gmra.mxu0 %vm80_vm0, %v2029_v4  ;;  %1760 = vmatprep.subr.mxu0 %v1106_v31 }
 0x287   :  { %1689 = vmatprep.mubr.msk.f32.mxu0 %vm80_vm0, %v2032_v2 }
 0x28a   :  { %1690 = vmatmul.mubr.msk.f32.gmra.mxu0 %vm80_vm0, %v2039_v6 }
 0x325   :  { %v1702_v36 = vpop.f32.mrf.mxu1 }
 0x327   :  { %v790_v37 = vpop.f32.mrf.mxu1 }
 0x329   :  { %v1705_v38 = vpop.f32.mrf.mxu1 }
 0x32b   :  { %v800_v40 = vpop.f32.mrf.mxu1 }
 0x32d   :  { %v1708_v44 = vpop.f32.mrf.mxu1 }
 0x32f   :  { %v810_v53 = vpop.f32.mrf.mxu1 }
 0x331   :  { %v1711_v5 = vpop.f32.mrf.mxu1 }
 0x333   :  { %v820_v17 = vpop.f32.mrf.mxu1 }
 0x33e   :  { %v1682_v22 = vpop.f32.mrf.mxu0 }
 0x340   :  { %v651_v23 = vpop.f32.mrf.mxu0 }
 0x341   :  { %1720 = vmatprep.mubr.msk.f32.mxu0 %vm292_vm1, %v651_v23 }
 0x342   :  { %v1685_v24 = vpop.f32.mrf.mxu0  ;;  %1721 = vmatmul.mubr.msk.f32.vlgmr.msra.gmra.mxu0 %vm292_vm1, %v1682_v22 }
 0x343   :  { %1761 = vmatpush3.msra.mxu0 %v1106_v31  ;;  %v1101_v31 = vld [vmem:[#allocation6 + $0x98] sm:$0xff] }
 0x344   :  { %v661_v25 = vpop.f32.mrf.mxu0  ;;  %1762 = vmatprep.subr.mxu0 %v1105_v33 }
 0x345   :  { %1723 = vmatprep.mubr.msk.f32.mxu0 %vm292_vm1, %v661_v25  ;;  %1763 = vmatpush3.msra.mxu0 %v1105_v33 }
 0x346   :  { %v1688_v26 = vpop.f32.mrf.mxu0  ;;  %1724 = vmatmul.mubr.msk.f32.gmra.mxu0 %vm292_vm1, %v1685_v24  ;;  %1764 = vmatprep.subr.mxu0 %v1104_v34 }
 0x347   :  { %1765 = vmatpush3.msra.mxu0 %v1104_v34 }
 0x348   :  { %v671_v27 = vpop.f32.mrf.mxu0  ;;  %1766 = vmatprep.subr.mxu0 %v1103_v35 }
 0x349   :  { %1726 = vmatprep.mubr.msk.f32.mxu0 %vm292_vm1, %v671_v27  ;;  %1767 = vmatpush3.msra.mxu0 %v1103_v35 }
 0x34a   :  { %v1691_v28 = vpop.f32.mrf.mxu0  ;;  %1727 = vmatmul.mubr.msk.f32.gmra.mxu0 %vm292_vm1, %v1688_v26  ;;  %1780 = vmatprep.subr.mxu0 %v1101_v31 }
 0x34c   :  { %v681_v30 = vpop.f32.mrf.mxu0 }
 0x34d   :  { %1729 = vmatprep.mubr.msk.f32.mxu0 %vm292_vm1, %v681_v30 }
 0x34e   :  { %1730 = vmatmul.mubr.msk.f32.gmra.mxu0 %vm292_vm1, %v1691_v28 }
 0x402   :  { %v1722_v42 = vpop.f32.mrf.mxu0 }
 0x403   :  { %v925_v43 = vadd.f32 %v1722_v42, %v1702_v36 }
 0x404   :  { %v919_v46 = vpop.f32.mrf.mxu0 }
 0x405   :  { %v963_v47 = vmul.f32 %v961_v41, %v925_v43  ;;  %v920_v48 = vadd.f32 %v919_v46, %v790_v37 }
 0x406   :  { %v1725_v49 = vpop.f32.mrf.mxu0 }
 0x407   :  { %v962_v51 = vmul.f32 %v961_v41, %v920_v48  ;;  %v935_v52 = vadd.f32 %v1725_v49, %v1705_v38  ;;  %v975_v54 = vadd.f32 %v973_v45, %v963_v47 }
 0x408   :  { %v929_v56 = vpop.f32.mrf.mxu0 }
 0x409   :  { %v974_v58 = vadd.f32 %v973_v45, %v962_v51  ;;  %v965_v59 = vmul.f32 %v961_v41, %v935_v52  ;;  %v930_v60 = vadd.f32 %v929_v56, %v800_v40  ;;  %v983_v7 = vmax.f32 %v975_v54, 0.0 }
 0x40a   :  { %v1728_v63 = vpop.f32.mrf.mxu0 }
 0x40b   :  { %v982_v0 = vmax.f32 %v974_v58, 0.0  ;;  %v964_v1 = vmul.f32 %v961_v41, %v930_v60  ;;  %v945_v3 = vadd.f32 %v1728_v63, %v1708_v44  ;;  %v977_v8 = vadd.f32 %v973_v45, %v965_v59  ;;  %v991_v44 = vld [vmem:[#allocation7 + $0x4] sm:$0x3] }
 0x40c   :  { %v939_v9 = vpop.f32.mrf.mxu0  ;;  %v1368_v46 = vrot.slane %v991_v44, %v2053_v29  ;;  %v1380_v49 = vrot.slane %v991_v44, %v2055_v32 }
 0x40d   :  { %v976_v10 = vadd.f32 %v973_v45, %v964_v1  ;;  %v967_v11 = vmul.f32 %v961_v41, %v945_v3  ;;  %v940_v12 = vadd.f32 %v939_v9, %v810_v53  ;;  %1768 = vmatprep.mubr.msk.f32.mxu0 %vm292_vm1, %v982_v0  ;;  %v985_v18 = vmax.f32 %v977_v8, 0.0 }
 0x40e   :  { %v1731_v13 = vpop.f32.mrf.mxu0  ;;  %1769 = vmatmul.mubr.msk.f32.vlgmr.msra.gmra.mxu0 %vm292_vm1, %v983_v7 }
 0x40f   :  { %v984_v14 = vmax.f32 %v976_v10, 0.0  ;;  %v966_v15 = vmul.f32 %v961_v41, %v940_v12  ;;  %v955_v16 = vadd.f32 %v1731_v13, %v1711_v5  ;;  %v979_v50 = vadd.f32 %v973_v45, %v967_v11  ;;  %1781 = vmatpush3.msra.mxu0 %v1101_v31 }
 0x410   :  { %v949_v19 = vpop.f32.mrf.mxu0 }
 0x411   :  { %v978_v20 = vadd.f32 %v973_v45, %v966_v15  ;;  %v969_v21 = vmul.f32 %v961_v41, %v955_v16  ;;  %v950_v22 = vadd.f32 %v949_v19, %v820_v17  ;;  %1771 = vmatprep.mubr.msk.f32.mxu0 %vm292_vm1, %v984_v14  ;;  %v987_v26 = vmax.f32 %v979_v50, 0.0 }
 0x412   :  { %1772 = vmatmul.mubr.msk.f32.gmra.mxu0 %vm292_vm1, %v985_v18 }
 0x413   :  { %v986_v23 = vmax.f32 %v978_v20, 0.0  ;;  %v968_v24 = vmul.f32 %v961_v41, %v950_v22  ;;  %v981_v25 = vadd.f32 %v973_v45, %v969_v21 }
 0x415   :  { %1774 = vmatprep.mubr.msk.f32.mxu0 %vm292_vm1, %v986_v23  ;;  %v989_v27 = vmax.f32 %v981_v25, 0.0  ;;  %v980_v28 = vadd.f32 %v973_v45, %v968_v24 }
 0x416   :  { %1775 = vmatmul.mubr.msk.f32.gmra.mxu0 %vm292_vm1, %v987_v26 }
 0x417   :  { %1732 = vmatprep.subr.mxu1 %v989_v27  ;;  %v988_v30 = vmax.f32 %v980_v28, 0.0 }
 0x418   :  { %1733 = vmatpush3.msra.mxu1 %v989_v27 }
 0x419   :  { %1734 = vmatprep.subr.mxu1 %v988_v30  ;;  %1777 = vmatprep.mubr.msk.f32.mxu0 %vm292_vm1, %v988_v30 }
 0x41a   :  { %1735 = vmatpush3.msra.mxu1 %v988_v30  ;;  %1778 = vmatmul.mubr.msk.f32.gmra.mxu0 %vm292_vm1, %v989_v27 }
 0x41b   :  { %1736 = vmatprep.subr.mxu1 %v987_v26 }
 0x41c   :  { %1737 = vmatpush3.msra.mxu1 %v987_v26 }
 0x41d   :  { %1738 = vmatprep.subr.mxu1 %v986_v23 }
 0x41e   :  { %1739 = vmatpush3.msra.mxu1 %v986_v23 }
 0x41f   :  { %1740 = vmatprep.subr.mxu1 %v985_v18 }
 0x420   :  { %1741 = vmatpush3.msra.mxu1 %v985_v18 }
 0x421   :  { %1742 = vmatprep.subr.mxu1 %v984_v14 }
 0x422   :  { %1743 = vmatpush3.msra.mxu1 %v984_v14 }
 0x423   :  { %1744 = vmatprep.subr.mxu1 %v983_v7 }
 0x424   :  { %1745 = vmatpush3.msra.mxu1 %v983_v7 }
 0x425   :  { %1746 = vmatprep.subr.mxu1 %v982_v0 }
 0x426   :  { %1747 = vmatpush3.msra.mxu1 %v982_v0 }
 0x427   :  { %1749 = vmatmul.mubr.msk.f32.vlgmr.msra.gmra.mxu1 %vm80_vm0, %v2009_v55  ;;  %v1100_v55 = vld [vmem:[#allocation6 + $0x90] sm:$0xff]  ;;  %1800 = vmatprep.subr.mxu1 %v1101_v31 }
 0x428   :  { %1751 = vmatprep.mubr.msk.f32.mxu1 %vm80_vm0, %v2012_v57  ;;  %1804 = vmatpush3.msra.mxu1 %v1101_v31  ;;  %v1099_v57 = vld [vmem:[#allocation6 + $0x88] sm:$0xff] }
 0x429   :  { %1801 = vmatprep.subr.mxu1 %v1100_v55  ;;  %1782 = vmatprep.subr.mxu0 %v1100_v55 }
 0x42a   :  { %1805 = vmatpush3.msra.mxu1 %v1100_v55  ;;  %1783 = vmatpush3.msra.mxu0 %v1100_v55 }
 0x42b   :  { %1752 = vmatmul.mubr.msk.f32.gmra.mxu1 %vm80_vm0, %v2019_v61  ;;  %1784 = vmatprep.subr.mxu0 %v1099_v57  ;;  %v1098_v61 = vld [vmem:[#allocation6 + $0x80] sm:$0xff] }
 0x42c   :  { %1754 = vmatprep.mubr.msk.f32.mxu1 %vm80_vm0, %v2022_v62  ;;  %1802 = vmatprep.subr.mxu1 %v1099_v57 }
 0x42d   :  { %1785 = vmatpush3.msra.mxu0 %v1099_v57  ;;  %1806 = vmatpush3.msra.mxu1 %v1099_v57 }
 0x42e   :  { %1786 = vmatprep.subr.mxu0 %v1098_v61  ;;  %1803 = vmatprep.subr.mxu1 %v1098_v61 }
 0x42f   :  { %1755 = vmatmul.mubr.msk.f32.gmra.mxu1 %vm80_vm0, %v2029_v4  ;;  %1787 = vmatpush3.msra.mxu0 %v1098_v61 }
 0x430   :  { %1757 = vmatprep.mubr.msk.f32.mxu1 %vm80_vm0, %v2032_v2  ;;  %1807 = vmatpush3.msra.mxu1 %v1098_v61 }
 0x433   :  { %1758 = vmatmul.mubr.msk.f32.gmra.mxu1 %vm80_vm0, %v2039_v6 }
 0x4ce   :  { %v1770_v37 = vpop.f32.mrf.mxu0 }
 0x4d0   :  { %v1197_v38 = vpop.f32.mrf.mxu0 }
 0x4d2   :  { %v1773_v39 = vpop.f32.mrf.mxu0 }
 0x4d4   :  { %v1207_v40 = vpop.f32.mrf.mxu0 }
 0x4d6   :  { %v1776_v41 = vpop.f32.mrf.mxu0 }
 0x4d8   :  { %v1217_v42 = vpop.f32.mrf.mxu0 }
 0x4da   :  { %v1779_v43 = vpop.f32.mrf.mxu0 }
 0x4dc   :  { %v1227_v45 = vpop.f32.mrf.mxu0 }
 0x4e7   :  { %v1750_v62 = vpop.f32.mrf.mxu1 }
 0x4e9   :  { %v1058_v4 = vpop.f32.mrf.mxu1 }
 0x4ea   :  { %1788 = vmatprep.mubr.msk.f32.mxu0 %vm292_vm1, %v1058_v4 }
 0x4eb   :  { %v1753_v2 = vpop.f32.mrf.mxu1  ;;  %1789 = vmatmul.mubr.msk.f32.vlgmr.msra.gmra.mxu0 %vm292_vm1, %v1750_v62 }
 0x4ed   :  { %v1068_v6 = vpop.f32.mrf.mxu1 }
 0x4ee   :  { %1791 = vmatprep.mubr.msk.f32.mxu1 %vm292_vm1, %v1068_v6 }
 0x4ef   :  { %v1756_v33 = vpop.f32.mrf.mxu1  ;;  %1792 = vmatmul.mubr.msk.f32.vlgmr.msra.gmra.mxu1 %vm292_vm1, %v1753_v2 }
 0x4f1   :  { %v1078_v34 = vpop.f32.mrf.mxu1 }
 0x4f2   :  { %1794 = vmatprep.mubr.msk.f32.mxu1 %vm292_vm1, %v1078_v34 }
 0x4f3   :  { %v1759_v35 = vpop.f32.mrf.mxu1  ;;  %1795 = vmatmul.mubr.msk.f32.gmra.mxu1 %vm292_vm1, %v1756_v33 }
 0x4f5   :  { %v1088_v36 = vpop.f32.mrf.mxu1 }
 0x4f6   :  { %1797 = vmatprep.mubr.msk.f32.mxu1 %vm292_vm1, %v1088_v36 }
 0x4f7   :  { %1798 = vmatmul.mubr.msk.f32.gmra.mxu1 %vm292_vm1, %v1759_v35 }
 0x5ab   :  { %v1790_v47 = vpop.f32.mrf.mxu0 }
 0x5ac   :  { %v1332_v48 = vadd.f32 %v1790_v47, %v1770_v37 }
 0x5ad   :  { %v1326_v51 = vpop.f32.mrf.mxu0 }
 0x5ae   :  { %v1370_v52 = vmul.f32 %v1368_v46, %v1332_v48  ;;  %v1327_v53 = vadd.f32 %v1326_v51, %v1197_v38 }
 0x5af   :  { %v1793_v54 = vpop.f32.mrf.mxu1 }
 0x5b0   :  { %v1382_v56 = vadd.f32 %v1380_v49, %v1370_v52  ;;  %v1369_v58 = vmul.f32 %v1368_v46, %v1327_v53  ;;  %v1342_v59 = vadd.f32 %v1793_v54, %v1773_v39 }
 0x5b1   :  { %v1336_v60 = vpop.f32.mrf.mxu1 }
 0x5b2   :  { %1390 = vst.msk [vmem:[%s2161_s4 + $0x8] sm:$0xff] %vm292_vm1, %v1382_v56  ;;  %v1381_v63 = vadd.f32 %v1380_v49, %v1369_v58  ;;  %v1372_v0 = vmul.f32 %v1368_v46, %v1342_v59  ;;  %v1337_v29 = vadd.f32 %v1336_v60, %v1207_v40 }
 0x5b3   :  { %v1796_v1 = vpop.f32.mrf.mxu1 }
 0x5b4   :  { %1389 = vst.msk [vmem:[%s2161_s4] sm:$0xff] %vm292_vm1, %v1381_v63  ;;  %v1384_v32 = vadd.f32 %v1380_v49, %v1372_v0  ;;  %v1371_v3 = vmul.f32 %v1368_v46, %v1337_v29  ;;  %v1352_v5 = vadd.f32 %v1796_v1, %v1776_v41 }
 0x5b5   :  { %v1346_v7 = vpop.f32.mrf.mxu1 }
 0x5b6   :  { %1392 = vst.msk [vmem:[%s2161_s4 + $0x18] sm:$0xff] %vm292_vm1, %v1384_v32  ;;  %v1383_v8 = vadd.f32 %v1380_v49, %v1371_v3  ;;  %v1374_v9 = vmul.f32 %v1368_v46, %v1352_v5  ;;  %v1347_v10 = vadd.f32 %v1346_v7, %v1217_v42 }
 0x5b7   :  { %v1799_v11 = vpop.f32.mrf.mxu1 }
 0x5b8   :  { %1391 = vst.msk [vmem:[%s2161_s4 + $0x10] sm:$0xff] %vm292_vm1, %v1383_v8  ;;  %v1386_v12 = vadd.f32 %v1380_v49, %v1374_v9  ;;  %v1373_v13 = vmul.f32 %v1368_v46, %v1347_v10  ;;  %v1362_v14 = vadd.f32 %v1799_v11, %v1779_v43 }
 0x5b9   :  { %v1356_v15 = vpop.f32.mrf.mxu1 }
 0x5ba   :  { %1394 = vst.msk [vmem:[%s2161_s4 + $0x28] sm:$0xff] %vm292_vm1, %v1386_v12  ;;  %v1385_v16 = vadd.f32 %v1380_v49, %v1373_v13  ;;  %v1376_v17 = vmul.f32 %v1368_v46, %v1362_v14  ;;  %v1357_v18 = vadd.f32 %v1356_v15, %v1227_v45 }
 0x5bc   :  { %1393 = vst.msk [vmem:[%s2161_s4 + $0x20] sm:$0xff] %vm292_vm1, %v1385_v16  ;;  %v1388_v50 = vadd.f32 %v1380_v49, %v1376_v17  ;;  %v1375_v19 = vmul.f32 %v1368_v46, %v1357_v18 }
 0x5be   :  { %1396 = vst.msk [vmem:[%s2161_s4 + $0x38] sm:$0xff] %vm292_vm1, %v1388_v50  ;;  %v1387_v20 = vadd.f32 %v1380_v49, %v1375_v19 }
 0x5c0   :  { %1395 = vst.msk [vmem:[%s2161_s4 + $0x30] sm:$0xff] %vm292_vm1, %v1387_v20 }
 0x5c1   :  { %1401 = vsyncpa [#allocation3], 1 }
 0x5c2   :  { %1402 = vsyncpa [#allocation5], 1 }
 0x5c3   :  { %1403 = vsyncpa [#allocation8], 1 }

</bundles_post_ra>
